<compile_context>
chip_gen: v7x
topology: tpu7x:2x2x1
jax: 0.10.0
libtpu: 0.0.40
codegen_flags: <defaults>
</compile_context>

<pallas_src>
import jax
import jax.numpy as jnp
from jax.experimental import pallas as pl
from jax.experimental.pallas import tpu as pltpu


def _round_up(x, m):
    return ((x + m - 1) // m) * m


def _mlp_kernel(x_ref, w1_ref, b1_ref, w2_ref, b2_ref, w3_ref, b3_ref, o_ref):
    # Layer 1: (TB, Fp)bf16 @ (Fp, 512)bf16 -> f32 accumulate; bias + ReLU in f32.
    h1 = jnp.dot(x_ref[...], w1_ref[...], preferred_element_type=jnp.float32)
    h1 = jnp.maximum(h1 + b1_ref[...], 0.0)
    # Layer 2: (TB, 512)bf16 @ (512, 128)bf16 -> f32.
    h2 = jnp.dot(h1.astype(jnp.bfloat16), w2_ref[...],
                 preferred_element_type=jnp.float32)
    h2 = jnp.maximum(h2 + b2_ref[...], 0.0)
    # Head, lane-dense: contract feature dims of (1,128) and (TB,128) -> (1, TB).
    out_row = jax.lax.dot_general(
        w3_ref[...], h2.astype(jnp.bfloat16),
        dimension_numbers=(((1,), (1,)), ((), ())),
        preferred_element_type=jnp.float32)
    o_ref[...] = out_row + b3_ref[...]


def net_forward(x, params, *, tile_b=None):
    """x: (B, nZones*nZones) float32. Returns (B,) float32, matching .view(-1)."""
    w1, b1, w2, b2, w3, b3 = params
    B, F = x.shape
    F_pad, h1_dim = w1.shape
    h2_dim = w2.shape[1]
    assert F <= F_pad

    if tile_b is None:
        tile_b = min(1024, _round_up(B, 16))     # safe on v5e/v6e/v7x VMEM budgets
    Bp = tile_b * pl.cdiv(B, tile_b)
    num_tiles = Bp // tile_b

    xp = x
    if Bp != B or F_pad != F:
        xp = jnp.pad(x, ((0, Bp - B), (0, F_pad - F)))
    xp = xp.astype(jnp.bfloat16)                 # halve x HBM traffic into the MXU

    const = lambda i: (0, 0)                     # weights/biases: VMEM-resident
    flops = 2 * Bp * (F_pad * h1_dim + h1_dim * h2_dim + h2_dim)
    bytes_accessed = (xp.size * xp.dtype.itemsize
                      + sum(a.size * a.dtype.itemsize
                            for a in (w1, b1, w2, b2, w3, b3))
                      + Bp * 4)

    out = pl.pallas_call(
        _mlp_kernel,
        out_shape=jax.ShapeDtypeStruct((1, Bp), jnp.float32),
        grid=(num_tiles,),
        in_specs=[
            pl.BlockSpec((tile_b, F_pad), lambda i: (i, 0)),   # x: tiled over batch
            pl.BlockSpec((F_pad, h1_dim), const),              # w1 (in, out) bf16
            pl.BlockSpec((1, h1_dim), const),                  # b1 f32
            pl.BlockSpec((h1_dim, h2_dim), const),             # w2 (in, out) bf16
            pl.BlockSpec((1, h2_dim), const),                  # b2 f32
            pl.BlockSpec((1, h2_dim), const),                  # w3 torch (out,in) bf16
            pl.BlockSpec((1, 1), const),                       # b3 f32
        ],
        out_specs=pl.BlockSpec((1, tile_b), lambda i: (0, i)),  # lane-dense row
        compiler_params=pltpu.CompilerParams(
            dimension_semantics=("parallel",),
            vmem_limit_bytes=32 * 1024 * 1024),
        cost_estimate=pl.CostEstimate(
            flops=flops, transcendentals=0, bytes_accessed=bytes_accessed),
    )(xp, w1, b1, w2, b2, w3, b3)
    return out.reshape(-1)[:B]


def init_params(key, n_zones):
    """Matches nn.Linear default init U(-1/sqrt(fan_in), 1/sqrt(fan_in)).
    w1/w2 stored (in, out); the head keeps torch's (out, in) = (1, 128) layout.
    Layer-1 input dim is zero-padded to a multiple of 128 (MXU K-alignment)."""
    f_in = n_zones * n_zones
    f_pad = _round_up(max(f_in, 128), 128)

    def linear(k, din, dout):
        kw, kb = jax.random.split(k)
        bound = 1.0 / jnp.sqrt(din)
        w = jax.random.uniform(kw, (din, dout), jnp.float32, -bound, bound)
        b = jax.random.uniform(kb, (1, dout), jnp.float32, -bound, bound)
        return w, b

    k1, k2, k3 = jax.random.split(key, 3)
    w1, b1 = linear(k1, f_in, 512)
    w1 = jnp.pad(w1, ((0, f_pad - f_in), (0, 0)))   # zero rows: mathematically a no-op
    w2, b2 = linear(k2, 512, 128)
    w3t, b3 = linear(k3, 128, 1)
    w3 = w3t.T                                      # (1, 128)
    return (w1.astype(jnp.bfloat16), b1,
            w2.astype(jnp.bfloat16), b2,
            w3.astype(jnp.bfloat16), b3)


def _reference(x, params):
    """Pure-JAX f32 reference with the same (bf16-stored) parameters."""
    w1, b1, w2, b2, w3, b3 = params
    xp = jnp.pad(x, ((0, 0), (0, w1.shape[0] - x.shape[1])))
    h1 = jnp.maximum(xp @ w1.astype(jnp.float32) + b1, 0.0)
    h2 = jnp.maximum(h1 @ w2.astype(jnp.float32) + b2, 0.0)
    out = h2 @ w3.astype(jnp.float32).T + b3
    return out.reshape(-1)


if __name__ == "__main__":
    n_zones = 8            # -> input feature dim = 64
    batch = 8
    key = jax.random.PRNGKey(0)
    key, kx = jax.random.split(key)
    x = jax.random.normal(kx, (batch, n_zones * n_zones), jnp.float32)
    params = init_params(key, n_zones)

    y = jax.jit(net_forward)(x, params)
    jax.block_until_ready(y)
    assert y.shape == (batch,), y.shape

    y_ref = _reference(x, params)
    max_err = float(jnp.max(jnp.abs(y - y_ref)))
    assert jnp.allclose(y, y_ref, atol=5e-2, rtol=5e-2), max_err
    print("KERNEL_OK")
</pallas_src>

<mosaic_0001>
module attributes {stable_mosaic.version = 11 : i64} {
  func.func @_mlp_kernel(%arg0: i32, %arg1: memref<16x128xbf16, #tpu.memory_space<vmem>>, %arg2: memref<128x512xbf16, #tpu.memory_space<vmem>>, %arg3: memref<1x512xf32, #tpu.memory_space<vmem>>, %arg4: memref<512x128xbf16, #tpu.memory_space<vmem>>, %arg5: memref<1x128xf32, #tpu.memory_space<vmem>>, %arg6: memref<1x128xbf16, #tpu.memory_space<vmem>>, %arg7: memref<1x1xf32, #tpu.memory_space<vmem>>, %arg8: memref<1x16xf32, #tpu.memory_space<vmem>>) attributes {dimension_semantics = [#tpu.dimension_semantics<parallel>], iteration_bounds = array<i64: 1>, scalar_prefetch = 0 : i64, scratch_operands = 0 : i64, tpu.core_type = #tpu.core_type<tc>, window_params = [{transform_indices = @transform_0, window_bounds = array<i64: 16, 128>}, {pipeline_mode = #tpu.pipeline_mode<synchronous>, transform_indices = @transform_1, window_bounds = array<i64: 128, 512>}, {pipeline_mode = #tpu.pipeline_mode<synchronous>, transform_indices = @transform_2, window_bounds = array<i64: 1, 512>}, {pipeline_mode = #tpu.pipeline_mode<synchronous>, transform_indices = @transform_3, window_bounds = array<i64: 512, 128>}, {pipeline_mode = #tpu.pipeline_mode<synchronous>, transform_indices = @transform_4, window_bounds = array<i64: 1, 128>}, {pipeline_mode = #tpu.pipeline_mode<synchronous>, transform_indices = @transform_5, window_bounds = array<i64: 1, 128>}, {pipeline_mode = #tpu.pipeline_mode<synchronous>, transform_indices = @transform_6, window_bounds = array<i64: 1, 1>}, {transform_indices = @transform_7, window_bounds = array<i64: 1, 16>}]} {
    %c0 = arith.constant 0 : index
    %c0_0 = arith.constant 0 : index
    %0 = vector.load %arg1[%c0, %c0_0] : memref<16x128xbf16, #tpu.memory_space<vmem>>, vector<16x128xbf16>
    %c0_1 = arith.constant 0 : index
    %c0_2 = arith.constant 0 : index
    %1 = vector.load %arg2[%c0_1, %c0_2] : memref<128x512xbf16, #tpu.memory_space<vmem>>, vector<128x512xbf16>
    %cst = arith.constant dense<0.000000e+00> : vector<16x512xf32>
    %2 = tpu.matmul %0, %1, %cst {dimension_numbers = #tpu.dot_dimension_numbers<[1], [0], [0], [1], [0, 0, 1, 1], [], []>} : vector<16x128xbf16>, vector<128x512xbf16>, vector<16x512xf32> -> vector<16x512xf32>
    %c0_3 = arith.constant 0 : index
    %c0_4 = arith.constant 0 : index
    %3 = vector.load %arg3[%c0_3, %c0_4] : memref<1x512xf32, #tpu.memory_space<vmem>>, vector<1x512xf32>
    %4 = vector.broadcast %3 : vector<1x512xf32> to vector<16x512xf32>
    %5 = arith.addf %2, %4 : vector<16x512xf32>
    %cst_5 = arith.constant 0.000000e+00 : f32
    %6 = vector.broadcast %cst_5 : f32 to vector<16x512xf32>
    %7 = arith.maximumf %5, %6 : vector<16x512xf32>
    %8 = arith.truncf %7 : vector<16x512xf32> to vector<16x512xbf16>
    %c0_6 = arith.constant 0 : index
    %c0_7 = arith.constant 0 : index
    %9 = vector.load %arg4[%c0_6, %c0_7] : memref<512x128xbf16, #tpu.memory_space<vmem>>, vector<512x128xbf16>
    %cst_8 = arith.constant dense<0.000000e+00> : vector<16x128xf32>
    %10 = tpu.matmul %8, %9, %cst_8 {dimension_numbers = #tpu.dot_dimension_numbers<[1], [0], [0], [1], [0, 0, 1, 1], [], []>} : vector<16x512xbf16>, vector<512x128xbf16>, vector<16x128xf32> -> vector<16x128xf32>
    %c0_9 = arith.constant 0 : index
    %c0_10 = arith.constant 0 : index
    %11 = vector.load %arg5[%c0_9, %c0_10] : memref<1x128xf32, #tpu.memory_space<vmem>>, vector<1x128xf32>
    %12 = vector.broadcast %11 : vector<1x128xf32> to vector<16x128xf32>
    %13 = arith.addf %10, %12 : vector<16x128xf32>
    %cst_11 = arith.constant 0.000000e+00 : f32
    %14 = vector.broadcast %cst_11 : f32 to vector<16x128xf32>
    %15 = arith.maximumf %13, %14 : vector<16x128xf32>
    %c0_12 = arith.constant 0 : index
    %c0_13 = arith.constant 0 : index
    %16 = vector.load %arg6[%c0_12, %c0_13] : memref<1x128xbf16, #tpu.memory_space<vmem>>, vector<1x128xbf16>
    %17 = arith.truncf %15 : vector<16x128xf32> to vector<16x128xbf16>
    %cst_14 = arith.constant dense<0.000000e+00> : vector<1x16xf32>
    %18 = tpu.matmul %16, %17, %cst_14 {dimension_numbers = #tpu.dot_dimension_numbers<[1], [1], [0], [0], [0, 0, 1, 0], [], []>} : vector<1x128xbf16>, vector<16x128xbf16>, vector<1x16xf32> -> vector<1x16xf32>
    %c0_15 = arith.constant 0 : index
    %c0_16 = arith.constant 0 : index
    %19 = vector.load %arg7[%c0_15, %c0_16] : memref<1x1xf32, #tpu.memory_space<vmem>>, vector<1x1xf32>
    %20 = vector.broadcast %19 : vector<1x1xf32> to vector<1x16xf32>
    %21 = arith.addf %18, %20 : vector<1x16xf32>
    %c0_17 = arith.constant 0 : index
    %c0_18 = arith.constant 0 : index
    %22 = vector.load %arg8[%c0_17, %c0_18] : memref<1x16xf32, #tpu.memory_space<vmem>>, vector<1x16xf32>
    tpu.vector_store %arg8[%c0_17, %c0_18], %21 {strides = array<i32>} : memref<1x16xf32, #tpu.memory_space<vmem>>, vector<1x16xf32>,
    return
  }
  func.func @transform_0(%arg0: i32) -> (i32, i32) {
    %c0_i32 = arith.constant 0 : i32
    %c0_i32_0 = arith.constant 0 : i32
    return %arg0, %c0_i32 : i32, i32
  }
  func.func @transform_1(%arg0: i32) -> (i32, i32) {
    %c0_i32 = arith.constant 0 : i32
    %c0_i32_0 = arith.constant 0 : i32
    %c0_i32_1 = arith.constant 0 : i32
    return %c0_i32, %c0_i32_0 : i32, i32
  }
  func.func @transform_2(%arg0: i32) -> (i32, i32) {
    %c0_i32 = arith.constant 0 : i32
    %c0_i32_0 = arith.constant 0 : i32
    %c0_i32_1 = arith.constant 0 : i32
    return %c0_i32, %c0_i32_0 : i32, i32
  }
  func.func @transform_3(%arg0: i32) -> (i32, i32) {
    %c0_i32 = arith.constant 0 : i32
    %c0_i32_0 = arith.constant 0 : i32
    %c0_i32_1 = arith.constant 0 : i32
    return %c0_i32, %c0_i32_0 : i32, i32
  }
  func.func @transform_4(%arg0: i32) -> (i32, i32) {
    %c0_i32 = arith.constant 0 : i32
    %c0_i32_0 = arith.constant 0 : i32
    %c0_i32_1 = arith.constant 0 : i32
    return %c0_i32, %c0_i32_0 : i32, i32
  }
  func.func @transform_5(%arg0: i32) -> (i32, i32) {
    %c0_i32 = arith.constant 0 : i32
    %c0_i32_0 = arith.constant 0 : i32
    %c0_i32_1 = arith.constant 0 : i32
    return %c0_i32, %c0_i32_0 : i32, i32
  }
  func.func @transform_6(%arg0: i32) -> (i32, i32) {
    %c0_i32 = arith.constant 0 : i32
    %c0_i32_0 = arith.constant 0 : i32
    %c0_i32_1 = arith.constant 0 : i32
    return %c0_i32, %c0_i32_0 : i32, i32
  }
  func.func @transform_7(%arg0: i32) -> (i32, i32) {
    %c0_i32 = arith.constant 0 : i32
    %c0_i32_0 = arith.constant 0 : i32
    return %c0_i32, %arg0 : i32, i32
  }
}

</mosaic_0001>

<bundles_post_ra>
// kernel: net_forward.1
= control target key start
LH: loop header
LB: loop body
LE: loop exit
PB: predicated region body
PF: predicated region fallthrough
CT: control target
= control target key end

     0   :  { %s1142_s0 = inlined_call_operand.vmem [shape: bf16[16,128], index: 0, kind: input, shape index: {}]   ;;  %s1143_s1 = inlined_call_operand.hbm [shape: bf16[128,512], index: 1, kind: input, shape index: {}]   ;;  %s1144_s2 = inlined_call_operand.vmem [shape: f32[1,512], index: 2, kind: input, shape index: {}]   ;;  %s1145_s3 = inlined_call_operand.hbm [shape: bf16[512,128], index: 3, kind: input, shape index: {}]   ;;  %s1146_s4 = inlined_call_operand.vmem [shape: f32[1,128], index: 4, kind: input, shape index: {}]   ;;  %s1147_s5 = inlined_call_operand.vmem [shape: bf16[1,128], index: 5, kind: input, shape index: {}]   ;;  %s1148_s6 = inlined_call_operand.<no memory space> [shape: f32[1,1], index: 6, kind: input, shape index: {}]   ;;  %s1149_s7 = inlined_call_operand.vmem [shape: f32[1,16], index: 7, kind: output, shape index: {}]  }
   0x1   :  { %v12_v0 = vstv %s1148_s6 }
   0x2   :  { %13 = vst [vmem:[#allocation2] sm:$0x1] %v12_v0 }
   0x3   :  { %14 = vsyncpa [#allocation4], 0 }
   0x4   :  { %15 = vsyncpa [#allocation6], 0  ;;  %s1041_s26 = smov [#allocation3]   ;;  %s993_s30 = scalar_lea.hbm %s1143_s1, 4096 }
   0x5   :  { %s23_s27 = sshll.u32 %s1041_s26, 4  ;;  %p994_p0 = scmp.ne.s32.totalorder %s1143_s1, %s993_s30  ;;  %s24_s27 = int_to_ptr.vmem [resolvable:$true] %s23_s27 }
   0x6   :  { %p997_p1 = scmp.lt.u32.totalorder %s993_s30, %s1143_s1 }
   0x8   :  { %p999_p2 = pnand %p997_p1, %p994_p0 }
   0xa   :  { %1002 = shalt.err (!%p999_p2)
}
   0xb   :  { %s1003_s6 = scalar_lea.vmem %s24_s27, 4096  ;;  %p1008_p4 = scmp.lt.s32.totalorder %s24_s27, %s24_s27 }
   0xc   :  { %p1004_p3 = scmp.ne.s32.totalorder %s24_s27, %s1003_s6  ;;  %p1009_p5 = scmp.lt.s32.totalorder %s1003_s6, %s1003_s6 }
   0xe   :  { %p1010_p6 = por %p1009_p5, %p1008_p4 }
  0x10   :  { %p1011_p7 = pnand %p1010_p6, %p1004_p3 }
  0x12   :  { %1014 = shalt.err (!%p1011_p7)
}
  0x13   :  { %s1042_s12 = smov 256   ;;  %s1043_s13 = smov 16  }
  0x14   :  { %29 = dma.hbm_to_vmem [thread:$0]  %s1143_s1, 4096, %s24_s27, [#allocation4], %s1042_s12, %s1042_s12, %s1043_s13  }
  0x15   :  { %s1044_s16 = smov [#allocation5]   ;;  %s1015_s20 = scalar_lea.hbm %s1145_s3, 4096 }
  0x16   :  { %s37_s17 = sshll.u32 %s1044_s16, 4  ;;  %p1016_p8 = scmp.ne.s32.totalorder %s1145_s3, %s1015_s20  ;;  %s38_s17 = int_to_ptr.vmem [resolvable:$true] %s37_s17 }
  0x17   :  { %p1019_p9 = scmp.lt.u32.totalorder %s1015_s20, %s1145_s3 }
  0x19   :  { %p1021_p10 = pnand %p1019_p9, %p1016_p8 }
  0x1b   :  { %1024 = shalt.err (!%p1021_p10)
}
  0x1c   :  { %s1025_s25 = scalar_lea.vmem %s38_s17, 4096  ;;  %p1030_p12 = scmp.lt.s32.totalorder %s38_s17, %s38_s17 }
  0x1d   :  { %p1026_p11 = scmp.ne.s32.totalorder %s38_s17, %s1025_s25  ;;  %p1031_p13 = scmp.lt.s32.totalorder %s1025_s25, %s1025_s25 }
  0x1f   :  { %p1032_p0 = por %p1031_p13, %p1030_p12 }
  0x21   :  { %p1033_p1 = pnand %p1032_p0, %p1026_p11 }
  0x23   :  { %1036 = shalt.err (!%p1033_p1)
}
  0x24   :  { %s1045_s1 = smov 64   ;;  %s1046_s26 = smov 4  }
  0x25   :  { %43 = dma.hbm_to_vmem [thread:$0]  %s1145_s3, 4096, %s38_s17, [#allocation6], %s1045_s1, %s1045_s1, %s1046_s26  }
  0x26   :  { %1037 = dma.done.wait [#allocation4], 4096  }
  0x27   :  { %1038 = vsyncadd [#allocation4], 4294963200 }
  0x28   :  { %1039 = dma.done.wait [#allocation6], 4096  }
  0x29   :  { %1040 = vsyncadd [#allocation6], 4294963200  ;;  %v1047_v1 = vmov 0   ;;  %v912_v2 = vld [vmem:[#allocation3 + $0x4] ss:$16 sps:$4 sm:$0xff]   ;;  %v965_v39 = vld [vmem:[#allocation5 + $0x48] sm:$0xff]  }
  0x2a   :  { %311 = vmatprep.mubr.bf16.mxu0 %v1047_v1  ;;  %354 = vmatprep.mubr.bf16.mxu1 %v1047_v1  ;;  %v914_v3 = vld [vmem:[#allocation3 + $0xc] ss:$16 sps:$4 sm:$0xff]   ;;  %v916_v4 = vld [vmem:[#allocation3] ss:$16 sps:$4 sm:$0xff]   ;;  %v917_v5 = vld [vmem:[#allocation3 + $0x8] ss:$16 sps:$4 sm:$0xff]  }
  0x2b   :  { %911 = vset.pattern.permute.xlu0 %v1047_v1  ;;  %279 = vmatprep.subr.bf16.mxu0 %v912_v2  ;;  %v918_v6 = vld [vmem:[#allocation3 + $0x24] ss:$16 sps:$4 sm:$0xff]   ;;  %v920_v7 = vld [vmem:[#allocation3 + $0x2c] ss:$16 sps:$4 sm:$0xff]   ;;  %v922_v8 = vld [vmem:[#allocation3 + $0x20] ss:$16 sps:$4 sm:$0xff]  }
  0x2c   :  { %322 = vmatprep.subr.bf16.mxu1 %v914_v3  ;;  %280 = vmatpush1.bf16.msra.mxu0 %v916_v4  ;;  %v923_v9 = vld [vmem:[#allocation3 + $0x28] ss:$16 sps:$4 sm:$0xff]   ;;  %v924_v10 = vld [vmem:[#allocation3 + $0x44] ss:$16 sps:$4 sm:$0xff]   ;;  %v926_v11 = vld [vmem:[#allocation3 + $0x4c] ss:$16 sps:$4 sm:$0xff]   ;;  %v93_v3 = vlaneseq }
  0x2d   :  { %323 = vmatpush1.bf16.msra.mxu1 %v917_v5  ;;  %281 = vmatprep.subr.bf16.mxu0 %v918_v6  ;;  %v928_v12 = vld [vmem:[#allocation3 + $0x40] ss:$16 sps:$4 sm:$0xff]   ;;  %v929_v13 = vld [vmem:[#allocation3 + $0x48] ss:$16 sps:$4 sm:$0xff]   ;;  %v930_v14 = vld [vmem:[#allocation3 + $0x64] ss:$16 sps:$4 sm:$0xff]  }
  0x2e   :  { %324 = vmatprep.subr.bf16.mxu1 %v920_v7  ;;  %v932_v15 = vld [vmem:[#allocation3 + $0x6c] ss:$16 sps:$4 sm:$0xff]   ;;  %v934_v16 = vld [vmem:[#allocation3 + $0x60] ss:$16 sps:$4 sm:$0xff]   ;;  %v935_v17 = vld [vmem:[#allocation3 + $0x68] ss:$16 sps:$4 sm:$0xff]  }
  0x2f   :  { %v936_v18 = vld [vmem:[#allocation3 + $0x84] ss:$16 sps:$4 sm:$0xff]   ;;  %v938_v19 = vld [vmem:[#allocation3 + $0x8c] ss:$16 sps:$4 sm:$0xff]   ;;  %v940_v20 = vld [vmem:[#allocation3 + $0x80] ss:$16 sps:$4 sm:$0xff]  }
  0x30   :  { %282 = vmatpush1.bf16.msra.mxu0 %v922_v8  ;;  %v941_v21 = vld [vmem:[#allocation3 + $0x88] ss:$16 sps:$4 sm:$0xff]   ;;  %v942_v22 = vld [vmem:[#allocation3 + $0xa4] ss:$16 sps:$4 sm:$0xff]   ;;  %v944_v23 = vld [vmem:[#allocation3 + $0xac] ss:$16 sps:$4 sm:$0xff]  }
  0x31   :  { %325 = vmatpush1.bf16.msra.mxu1 %v923_v9  ;;  %283 = vmatprep.subr.bf16.mxu0 %v924_v10  ;;  %v946_v24 = vld [vmem:[#allocation3 + $0xa0] ss:$16 sps:$4 sm:$0xff]   ;;  %v947_v25 = vld [vmem:[#allocation3 + $0xa8] ss:$16 sps:$4 sm:$0xff]   ;;  %v948_v26 = vld [vmem:[#allocation3 + $0xc4] ss:$16 sps:$4 sm:$0xff]  }
  0x32   :  { %326 = vmatprep.subr.bf16.mxu1 %v926_v11  ;;  %v950_v27 = vld [vmem:[#allocation3 + $0xcc] ss:$16 sps:$4 sm:$0xff]   ;;  %v952_v28 = vld [vmem:[#allocation3 + $0xc0] ss:$16 sps:$4 sm:$0xff]   ;;  %v953_v29 = vld [vmem:[#allocation3 + $0xc8] ss:$16 sps:$4 sm:$0xff]  }
  0x33   :  { %v954_v30 = vld [vmem:[#allocation3 + $0xe4] ss:$16 sps:$4 sm:$0xff]   ;;  %v956_v31 = vld [vmem:[#allocation3 + $0xec] ss:$16 sps:$4 sm:$0xff]   ;;  %v958_v32 = vld [vmem:[#allocation3 + $0xe0] ss:$16 sps:$4 sm:$0xff]  }
  0x34   :  { %284 = vmatpush1.bf16.msra.mxu0 %v928_v12  ;;  %v959_v33 = vld [vmem:[#allocation3 + $0xe8] ss:$16 sps:$4 sm:$0xff]   ;;  %v961_v34 = vld [vmem:[#allocation5 + $0x40] sm:$0xff]   ;;  %v969_v43 = vld [vmem:[#allocation5 + $0x50] sm:$0xff]   ;;  %v1120_v4 = vshrl.u32 %v93_v3, 7  ;;  %vm1049_vm0 = vmmov 0  }
  0x35   :  { %327 = vmatpush1.bf16.msra.mxu1 %v929_v13  ;;  %285 = vmatprep.subr.bf16.mxu0 %v930_v14  ;;  %v960_v35 = vld [vmem:[%s1142_s0] sm:$0xff]   ;;  %v966_v40 = vld [vmem:[#allocation5 + $0xc8] sm:$0xff]   ;;  %v970_v44 = vld [vmem:[#allocation5 + $0xd0] sm:$0xff]   ;;  %vm776_vm1 = vcmask 122880  }
  0x36   :  { %328 = vmatprep.subr.bf16.mxu1 %v932_v15  ;;  %v962_v36 = vld [vmem:[#allocation5 + $0xc0] sm:$0xff]   ;;  %v967_v41 = vld [vmem:[#allocation5 + $0x8] sm:$0xff]   ;;  %v971_v45 = vld [vmem:[#allocation5 + $0x10] sm:$0xff]   ;;  %v95_v5 = vsub.s32 0, %v1120_v4  ;;  %v103_v6 = vsub.s32 2, %v1120_v4  ;;  %v99_v8 = vsub.s32 1, %v1120_v4 }
  0x37   :  { %v963_v37 = vld [vmem:[#allocation5] sm:$0xff]   ;;  %v968_v42 = vld [vmem:[#allocation5 + $0x88] sm:$0xff]   ;;  %v972_v46 = vld [vmem:[#allocation5 + $0x90] sm:$0xff]   ;;  %v107_v9 = vsub.s32 3, %v1120_v4 }
  0x38   :  { %286 = vmatpush1.bf16.msra.mxu0 %v934_v16  ;;  %v964_v38 = vld [vmem:[#allocation5 + $0x80] sm:$0xff]   ;;  %v973_v47 = vld [vmem:[#allocation5 + $0x58] sm:$0xff]   ;;  %v981_v55 = vld [vmem:[#allocation5 + $0x68] sm:$0xff]  }
  0x39   :  { %329 = vmatpush1.bf16.msra.mxu1 %v935_v17  ;;  %287 = vmatprep.subr.bf16.mxu0 %v936_v18  ;;  %v974_v48 = vld [vmem:[#allocation5 + $0xd8] sm:$0xff]   ;;  %v977_v51 = vld [vmem:[#allocation5 + $0x60] sm:$0xff]   ;;  %v982_v56 = vld [vmem:[#allocation5 + $0xe8] sm:$0xff]  }
  0x3a   :  { %330 = vmatprep.subr.bf16.mxu1 %v938_v19  ;;  %v975_v49 = vld [vmem:[#allocation5 + $0x18] sm:$0xff]   ;;  %v978_v52 = vld [vmem:[#allocation5 + $0xe0] sm:$0xff]   ;;  %v983_v57 = vld [vmem:[#allocation5 + $0x28] sm:$0xff]  }
  0x3b   :  { %v976_v50 = vld [vmem:[#allocation5 + $0x98] sm:$0xff]   ;;  %v979_v53 = vld [vmem:[#allocation5 + $0x20] sm:$0xff]   ;;  %v984_v58 = vld [vmem:[#allocation5 + $0xa8] sm:$0xff]  }
  0x3c   :  { %288 = vmatpush1.bf16.msra.mxu0 %v940_v20  ;;  %v980_v54 = vld [vmem:[#allocation5 + $0xa0] sm:$0xff]   ;;  %v985_v59 = vld [vmem:[#allocation5 + $0x70] sm:$0xff]   ;;  %v989_v63 = vld [vmem:[#allocation5 + $0x78] sm:$0xff]  }
  0x3d   :  { %331 = vmatpush1.bf16.msra.mxu1 %v941_v21  ;;  %289 = vmatprep.subr.bf16.mxu0 %v942_v22  ;;  %v986_v60 = vld [vmem:[#allocation5 + $0xf0] sm:$0xff]   ;;  %v990_v0 = vld [vmem:[#allocation5 + $0xf8] sm:$0xff]  }
  0x3e   :  { %332 = vmatprep.subr.bf16.mxu1 %v944_v23  ;;  %v987_v61 = vld [vmem:[#allocation5 + $0x30] sm:$0xff]   ;;  %v991_v1 = vld [vmem:[#allocation5 + $0x38] sm:$0xff]  }
  0x3f   :  { %v988_v62 = vld [vmem:[#allocation5 + $0xb0] sm:$0xff]   ;;  %v992_v2 = vld [vmem:[#allocation5 + $0xb8] sm:$0xff]  }
  0x40   :  { %290 = vmatpush1.bf16.msra.mxu0 %v946_v24  ;;  %v91_v7 = vld [vmem:[%s1144_s2] sm:$0xf] }
  0x41   :  { %333 = vmatpush1.bf16.msra.mxu1 %v947_v25  ;;  %291 = vmatprep.subr.bf16.mxu0 %v948_v26  ;;  %v96_v10 = vrot.slane %v91_v7, %v95_v5  ;;  %v104_v11 = vrot.slane %v91_v7, %v103_v6  ;;  %v100_v12 = vrot.slane %v91_v7, %v99_v8 }
  0x42   :  { %334 = vmatprep.subr.bf16.mxu1 %v950_v27  ;;  %v108_v13 = vrot.slane %v91_v7, %v107_v9 }
  0x44   :  { %292 = vmatpush1.bf16.msra.mxu0 %v952_v28 }
  0x45   :  { %335 = vmatpush1.bf16.msra.mxu1 %v953_v29  ;;  %293 = vmatprep.subr.bf16.mxu0 %v954_v30 }
  0x46   :  { %336 = vmatprep.subr.bf16.mxu1 %v956_v31 }
  0x48   :  { %294 = vmatpush1.bf16.msra.mxu0 %v958_v32 }
  0x49   :  { %337 = vmatpush1.bf16.msra.mxu1 %v959_v33  ;;  %850 = vmatprep.subr.bf16.mxu0 %v961_v34 }
  0x4a   :  { %872 = vmatprep.subr.bf16.mxu1 %v962_v36 }
  0x4b   :  { %312 = vmatmul.mubr.bf16.vlgmr.msra.gmra.mrb[0].mxu0 %v960_v35 }
  0x4c   :  { %355 = vmatmul.mubr.bf16.vlgmr.msra.gmra.mrb[0].mxu1 %v960_v35  ;;  %851 = vmatpush3.bf16.msra.mxu0 %v963_v37 }
  0x4d   :  { %873 = vmatpush3.bf16.msra.mxu1 %v964_v38  ;;  %852 = vmatprep.subr.bf16.mxu0 %v965_v39 }
  0x4e   :  { %874 = vmatprep.subr.bf16.mxu1 %v966_v40 }
  0x50   :  { %853 = vmatpush3.bf16.msra.mxu0 %v967_v41 }
  0x51   :  { %875 = vmatpush3.bf16.msra.mxu1 %v968_v42  ;;  %854 = vmatprep.subr.bf16.mxu0 %v969_v43  ;;  %v1048_v42 = vmov 0.0   ;;  %v726_v43 = vld [vmem:[#allocation2] sm:$0x1] }
  0x52   :  { %876 = vmatprep.subr.bf16.mxu1 %v970_v44  ;;  %729 = vperm.xlu0 %911, %v726_v43  }
  0x54   :  { %855 = vmatpush3.bf16.msra.mxu0 %v971_v45 }
  0x55   :  { %877 = vmatpush3.bf16.msra.mxu1 %v972_v46  ;;  %856 = vmatprep.subr.bf16.mxu0 %v973_v47  ;;  %v817_v46 = vld [vmem:[%s1146_s4] ss:$0 sm:$0xff] }
  0x56   :  { %878 = vmatprep.subr.bf16.mxu1 %v974_v48 }
  0x58   :  { %857 = vmatpush3.bf16.msra.mxu0 %v975_v49 }
  0x59   :  { %879 = vmatpush3.bf16.msra.mxu1 %v976_v50  ;;  %858 = vmatprep.subr.bf16.mxu0 %v977_v51 }
  0x5a   :  { %880 = vmatprep.subr.bf16.mxu1 %v978_v52 }
  0x5c   :  { %859 = vmatpush3.bf16.msra.mxu0 %v979_v53 }
  0x5d   :  { %881 = vmatpush3.bf16.msra.mxu1 %v980_v54  ;;  %860 = vmatprep.subr.bf16.mxu0 %v981_v55 }
  0x5e   :  { %882 = vmatprep.subr.bf16.mxu1 %v982_v56 }
  0x60   :  { %861 = vmatpush3.bf16.msra.mxu0 %v983_v57 }
  0x61   :  { %883 = vmatpush3.bf16.msra.mxu1 %v984_v58  ;;  %862 = vmatprep.subr.bf16.mxu0 %v985_v59 }
  0x62   :  { %884 = vmatprep.subr.bf16.mxu1 %v986_v60 }
  0x64   :  { %863 = vmatpush3.bf16.msra.mxu0 %v987_v61 }
  0x65   :  { %885 = vmatpush3.bf16.msra.mxu1 %v988_v62  ;;  %864 = vmatprep.subr.bf16.mxu0 %v989_v63 }
  0x66   :  { %886 = vmatprep.subr.bf16.mxu1 %v990_v0  ;;  %v724_v0 = vld [vmem:[%s1147_s5] sm:$0x1] }
  0x68   :  { %865 = vmatpush3.bf16.msra.mxu0 %v991_v1 }
  0x69   :  { %887 = vmatpush3.bf16.msra.mxu1 %v992_v2  ;;  %896 = vmatprep.subr.bf16.mxu0 %v1048_v42 }
  0xd1   :  { %v730_v1 = vpop.permute.xlu0 %729 }
  0xd2   :  { %v735_v2 = vrot.slane %v730_v1, %v95_v5 }
 0x11e   :  { %v313_v14 = vpop.f32.mrb[0].mxu0 }
 0x11f   :  { %v356_v15 = vpop.f32.mrb[0].mxu1  ;;  %v314_v16 = vadd.f32 %v313_v14, %v96_v10  ;;  %v315_v18 = vpop.f32.mrb[1].mxu0 }
 0x120   :  { %v357_v17 = vadd.f32 %v356_v15, %v104_v11  ;;  %v358_v19 = vpop.f32.mrb[1].mxu1  ;;  %v316_v20 = vadd.f32 %v315_v18, %v100_v12  ;;  %v317_v22 = vpop.f32.mrb[2].mxu0 }
 0x121   :  { %v359_v21 = vadd.f32 %v358_v19, %v108_v13  ;;  %v360_v23 = vpop.f32.mrb[2].mxu1  ;;  %v318_v25 = vadd.f32 %v317_v22, %v96_v10  ;;  %v319_v27 = vpop.f32.mrb[3].mxu0  ;;  %v365_v32 = vmax.f32 %v314_v16, 0.0 }
 0x122   :  { %v367_v24 = vmax.f32 %v357_v17, 0.0  ;;  %v361_v26 = vadd.f32 %v360_v23, %v104_v11  ;;  %v362_v28 = vpop.f32.mrb[3].mxu1  ;;  %v320_v30 = vadd.f32 %v319_v27, %v100_v12  ;;  %v366_v35 = vmax.f32 %v316_v20, 0.0 }
 0x123   :  { %v368_v29 = vmax.f32 %v359_v21, 0.0  ;;  %v363_v31 = vadd.f32 %v362_v28, %v108_v13  ;;  %v369_v33 = vmax.f32 %v318_v25, 0.0 }
 0x124   :  { %v371_v34 = vmax.f32 %v361_v26, 0.0  ;;  %v370_v36 = vmax.f32 %v320_v30, 0.0 }
 0x125   :  { %v372_v37 = vmax.f32 %v363_v31, 0.0  ;;  %v373_v38 = vpack.c.bf16 %v369_v33, %v365_v32 }
 0x126   :  { %v375_v39 = vpack.c.bf16 %v371_v34, %v367_v24  ;;  %v374_v40 = vpack.c.bf16 %v370_v36, %v366_v35 }
 0x127   :  { %v376_v41 = vpack.c.bf16 %v372_v37, %v368_v29 }
 0x128   :  { %672 = vmatprep.mubr.bf16.mxu0 %v374_v40 }
 0x129   :  { %713 = vmatprep.mubr.bf16.mxu1 %v376_v41  ;;  %673 = vmatmul.mubr.bf16.vlgmr.msra.gmra.mrb[4].mxu0 %v373_v38 }
 0x12a   :  { %714 = vmatmul.mubr.bf16.vlgmr.msra.gmra.mrb[4].mxu1 %v375_v39  ;;  %898 = vmatprep.mubr.msk.bf16.mxu0 %vm1049_vm0, %v1048_v42 }
 0x1fc   :  { %v866_v44 = vpop.f32.mrb[4].mxu0 }
 0x1fd   :  { %v888_v45 = vpop.f32.mrb[4].mxu1  ;;  %v867_v47 = vpop.f32.mrb[5].mxu0 }
 0x1fe   :  { %v889_v48 = vpop.f32.mrb[5].mxu1  ;;  %v868_v49 = vadd.f32 %v867_v47, %v866_v44  ;;  %v869_v51 = vpop.f32.mrb[6].mxu0 }
 0x1ff   :  { %v890_v50 = vadd.f32 %v889_v48, %v888_v45  ;;  %v891_v52 = vpop.f32.mrb[6].mxu1  ;;  %v870_v53 = vpop.f32.mrb[7].mxu0 }
 0x200   :  { %v892_v54 = vpop.f32.mrb[7].mxu1  ;;  %v675_v55 = vadd.f32 %v868_v49, %v817_v46  ;;  %v871_v56 = vadd.f32 %v870_v53, %v869_v51 }
 0x201   :  { %v893_v57 = vadd.f32 %v892_v54, %v891_v52 }
 0x202   :  { %v716_v58 = vadd.f32 %v890_v50, %v675_v55  ;;  %v678_v59 = vadd.f32 %v871_v56, %v817_v46 }
 0x204   :  { %v719_v60 = vadd.f32 %v893_v57, %v678_v59  ;;  %v722_v61 = vmax.f32 %v716_v58, 0.0 }
 0x206   :  { %v723_v62 = vmax.f32 %v719_v60, 0.0 }
 0x208   :  { %v725_v63 = vpack.c.bf16 %v723_v62, %v722_v61 }
 0x20a   :  { %897 = vmatpush3.bf16.xpose.msra.mxu0 %v725_v63 }
 0x211   :  { %899 = vmatmul.mubr.bf16.vlgmr.msra.gmra.mrb[8].mxu0 %v724_v0 }
 0x2e4   :  { %v770_v3 = vpop.f32.mrb[8].mxu0 }
 0x2e5   :  { %v771_v6 = vadd.f32 %v770_v3, %v735_v2  ;;  %v900_v7 = vpop.f32.mrb[9].mxu0 }
 0x2e6   :  { %v773_v8 = vpop.f32.mrb[10].mxu0 }
 0x2e7   :  { %777 = vst.msk [vmem:[%s1149_s7] sm:$0x1] %vm776_vm1, %v771_v6  ;;  %v901_v9 = vpop.f32.mrb[11].mxu0 }
 0x2e8   :  { %782 = vsyncpa [#allocation4], 1 }
 0x2e9   :  { %783 = vsyncpa [#allocation6], 1 }

</bundles_post_ra>
